<compile_context>
chip_gen: v7x
topology: tpu7x:2x2x1
jax: 0.10.0
libtpu: 0.0.40
codegen_flags: <defaults>
</compile_context>

<pallas_src>
import jax
import jax.numpy as jnp
import numpy as np
from jax.experimental import pallas as pl
from jax.experimental.pallas import tpu as pltpu


# ----------------------------------------------------------------------------
# Block-size selection helpers
# ----------------------------------------------------------------------------
_STATS_BLOCK_BUDGET = 10 * 1024 * 1024   # x-block bytes, stats pass (input only)
_AFFINE_BLOCK_BUDGET = 6 * 1024 * 1024   # x-block bytes, affine pass (in + out)
_VMEM_SLACK = 4 * 1024 * 1024
_MAX_ROWS_BLK = 4096                     # bounds lane-padded scale/shift waste


def _pick_dim_block(n, cap, align):
    """Largest block size for a dim of extent n that divides n and is either a
    multiple of `align` or equal to n (the (8,128) BlockSpec rule); <= cap if
    at all possible."""
    cap = int(max(1, cap))
    if n <= cap:
        return n
    d = (cap // align) * align
    while d >= align:
        if n % d == 0:
            return d
        d -= align
    # No aligned divisor <= cap: take the smallest aligned divisor (> cap) to
    # minimize VMEM overshoot; as a last resort fall back to the full extent.
    # TODO(synk): awkward extents with no aligned divisor still produce one
    # oversized block; masked partial blocks would remove this corner case.
    d = align
    while d < n:
        if n % d == 0:
            return d
        d += align
    return n


def _choose_blocks_2d(R, HW, itemsize, budget_bytes):
    """Pick (rows_blk, hw_blk) for a (R, HW) array."""
    if HW * itemsize * 8 <= budget_bytes:
        hw_blk = HW                              # full rows fit: tile rows only
    else:
        hw_blk = _pick_dim_block(HW, max(128, budget_bytes // (8 * itemsize)), 128)
    row_cap = min(_MAX_ROWS_BLK, max(1, budget_bytes // (hw_blk * itemsize)))
    rows_blk = _pick_dim_block(R, row_cap, 8)
    # Guarantee >= 2 grid steps along a parallel axis so both v7x TensorCores
    # get work (a (1,1) grid idles one core).  No-op on v5e/v6e correctness.
    if (R // rows_blk) * (HW // hw_blk) < 2:
        if hw_blk % 256 == 0:
            hw_blk //= 2
        elif rows_blk % 16 == 0:
            rows_blk //= 2
    return rows_blk, hw_blk


def _padded_block_bytes(rows, cols, itemsize):
    pr = -(-rows // 8) * 8
    pc = -(-cols // 128) * 128
    return pr * pc * itemsize


def _vmem_limit_bytes(blocks):
    """blocks: list of (rows, cols, itemsize) of every double-buffered operand."""
    need = sum(2 * _padded_block_bytes(r, c, isz) for (r, c, isz) in blocks)
    need += _VMEM_SLACK
    return int(min(40 * 1024 * 1024, max(32 * 1024 * 1024, need)))


# ----------------------------------------------------------------------------
# Kernel 1: per-row (per (n,c) slab, per spatial chunk) sum + centered M2
# ----------------------------------------------------------------------------
def _make_stats_kernel(hw_blk):
    inv_hw = 1.0 / float(hw_blk)

    def kernel(x_ref, osum_ref, om2_ref):
        # x_ref: (rows_blk, hw_blk); osum/om2: (1, 1, rows_blk, 1)
        x = x_ref[...].astype(jnp.float32)
        s = jnp.sum(x, axis=1, keepdims=True)            # (rows_blk, 1) lane reduce
        mean = s * inv_hw
        d = x - mean                                     # block-centered
        m2 = jnp.sum(d * d, axis=1, keepdims=True)       # (rows_blk, 1)
        osum_ref[...] = s[None, None, :, :]
        om2_ref[...] = m2[None, None, :, :]

    return kernel


def _per_channel_stats(x2, N, C):
    """x2: (N*C, HW) -> (mean_c, var_c), each (C,), f32 (biased variance)."""
    R, HW = x2.shape
    isz = x2.dtype.itemsize
    rows_blk, hw_blk = _choose_blocks_2d(R, HW, isz, _STATS_BLOCK_BUDGET)
    gn, gs = R // rows_blk, HW // hw_blk

    part_shape = jax.ShapeDtypeStruct((gn, gs, rows_blk, 1), jnp.float32)
    out_spec = pl.BlockSpec((1, 1, rows_blk, 1), lambda g, s: (g, s, 0, 0))

    psum, pm2 = pl.pallas_call(
        _make_stats_kernel(hw_blk),
        out_shape=(part_shape, part_shape),
        grid_spec=pltpu.PrefetchScalarGridSpec(
            num_scalar_prefetch=0,
            grid=(gn, gs),
            in_specs=[pl.BlockSpec((rows_blk, hw_blk), lambda g, s: (g, s))],
            out_specs=[out_spec, out_spec],
        ),
        compiler_params=pltpu.CompilerParams(
            dimension_semantics=("parallel", "parallel"),
            vmem_limit_bytes=_vmem_limit_bytes(
                [(rows_blk, hw_blk, isz), (rows_blk, 1, 4), (rows_blk, 1, 4)]),
        ),
        cost_estimate=pl.CostEstimate(
            flops=4 * R * HW, transcendentals=0,
            bytes_accessed=R * HW * isz),
    )(x2)

    # ---- tiny finalization in plain JAX (Chan-style chunk combination) ----
    sums = jnp.swapaxes(psum[..., 0], 1, 2).reshape(R, gs)      # (R, gs)
    m2s = jnp.swapaxes(pm2[..., 0], 1, 2).reshape(R, gs)

    row_sum = jnp.sum(sums, axis=1)                              # (R,)
    row_mean = row_sum / HW
    chunk_mean = sums / hw_blk
    row_m2 = jnp.sum(m2s, axis=1) + hw_blk * jnp.sum(
        (chunk_mean - row_mean[:, None]) ** 2, axis=1)           # (R,)

    row_mean_nc = row_mean.reshape(N, C)
    row_m2_nc = row_m2.reshape(N, C)
    mean_c = jnp.mean(row_mean_nc, axis=0)                       # (C,)
    var_c = (jnp.sum(row_m2_nc, axis=0)
             + HW * jnp.sum((row_mean_nc - mean_c[None, :]) ** 2, axis=0)
             ) / (N * HW)
    return mean_c, var_c


# ----------------------------------------------------------------------------
# Kernel 2: fused per-row affine  out = x * scale[row] + shift[row]
# ----------------------------------------------------------------------------
def _affine_kernel(x_ref, scale_ref, shift_ref, o_ref):
    # x_ref/o_ref: (rows_blk, hw_blk); scale_ref/shift_ref: (rows_blk, 1)
    x = x_ref[...].astype(jnp.float32)
    o_ref[...] = (x * scale_ref[...] + shift_ref[...]).astype(o_ref.dtype)


def _row_affine(x2, scale_r, shift_r):
    """x2: (R, HW), scale_r/shift_r: (R,). Returns (R, HW) in x2.dtype."""
    R, HW = x2.shape
    isz = x2.dtype.itemsize
    rows_blk, hw_blk = _choose_blocks_2d(R, HW, isz, _AFFINE_BLOCK_BUDGET)
    gn, gs = R // rows_blk, HW // hw_blk

    scale2 = scale_r.reshape(R, 1).astype(jnp.float32)
    shift2 = shift_r.reshape(R, 1).astype(jnp.float32)

    return pl.pallas_call(
        _affine_kernel,
        out_shape=jax.ShapeDtypeStruct((R, HW), x2.dtype),
        grid_spec=pltpu.PrefetchScalarGridSpec(
            num_scalar_prefetch=0,
            grid=(gn, gs),
            in_specs=[
                pl.BlockSpec((rows_blk, hw_blk), lambda g, s: (g, s)),
                pl.BlockSpec((rows_blk, 1), lambda g, s: (g, 0)),
                pl.BlockSpec((rows_blk, 1), lambda g, s: (g, 0)),
            ],
            out_specs=pl.BlockSpec((rows_blk, hw_blk), lambda g, s: (g, s)),
        ),
        compiler_params=pltpu.CompilerParams(
            dimension_semantics=("parallel", "parallel"),
            vmem_limit_bytes=_vmem_limit_bytes(
                [(rows_blk, hw_blk, isz), (rows_blk, hw_blk, isz),
                 (rows_blk, 1, 4), (rows_blk, 1, 4)]),
        ),
        cost_estimate=pl.CostEstimate(
            flops=2 * R * HW, transcendentals=0,
            bytes_accessed=2 * R * HW * isz),
    )(x2, scale2, shift2)


# ----------------------------------------------------------------------------
# jitted forward passes (pure functions)
# ----------------------------------------------------------------------------
def _qbn_forward_train(x, gamma_q, beta_c, eps):
    # x: (N, C, H, W); gamma_q: (C//4,); beta_c: (C,)
    N, C, H, W = x.shape
    Cq = C // 4
    x2 = x.reshape(N * C, H * W)                       # free reshape (contiguous)

    mean_c, var_c = _per_channel_stats(x2, N, C)       # (C,), (C,)
    quat_var = jnp.sum(var_c.reshape(4, Cq), axis=0)   # (Cq,)
    inv_denom = 1.0 / jnp.sqrt(quat_var + eps)         # (Cq,)
    scale_c = jnp.tile(gamma_q * inv_denom, 4)         # (C,)
    shift_c = beta_c - scale_c * mean_c                # (C,)

    scale_r = jnp.broadcast_to(scale_c, (N, C)).reshape(N * C)
    shift_r = jnp.broadcast_to(shift_c, (N, C)).reshape(N * C)
    out2 = _row_affine(x2, scale_r, shift_r)
    return out2.reshape(N, C, H, W), mean_c, quat_var


def _qbn_forward_eval(x, gamma_q, beta_c, mean_c, run_var, eps):
    N, C, H, W = x.shape
    inv_denom = 1.0 / jnp.sqrt(run_var + eps)
    scale_c = jnp.tile(gamma_q * inv_denom, 4)
    shift_c = beta_c - scale_c * mean_c
    scale_r = jnp.broadcast_to(scale_c, (N, C)).reshape(N * C)
    shift_r = jnp.broadcast_to(shift_c, (N, C)).reshape(N * C)
    x2 = x.reshape(N * C, H * W)
    out2 = _row_affine(x2, scale_r, shift_r)
    return out2.reshape(N, C, H, W)


_qbn_forward_train_jit = jax.jit(_qbn_forward_train)
_qbn_forward_eval_jit = jax.jit(_qbn_forward_eval)


# ----------------------------------------------------------------------------
# Module (forward only, matching the PyTorch QuaternionBatchNorm2d)
# ----------------------------------------------------------------------------
class QuaternionBatchNorm2dPallas:
    def __init__(self, num_features, gamma_init=1.0, beta_param=True,
                 momentum=0.9, training=True):
        assert num_features % 4 == 0
        self.num_features = num_features // 4      # quaternion channels (Cq)
        self.momentum = momentum
        self.gamma_init = gamma_init
        self.beta_param = beta_param
        self.training = training
        self.eps = 1e-5

        cq = self.num_features
        self.gamma = jnp.full((1, cq, 1, 1), gamma_init, dtype=jnp.float32)
        self.beta = jnp.zeros((1, cq * 4, 1, 1), dtype=jnp.float32)

        self.running_mean_r = jnp.zeros((cq,), jnp.float32)
        self.running_mean_i = jnp.zeros((cq,), jnp.float32)
        self.running_mean_j = jnp.zeros((cq,), jnp.float32)
        self.running_mean_k = jnp.zeros((cq,), jnp.float32)
        self.running_variance = jnp.ones((cq,), jnp.float32)

    def __call__(self, x):
        N, C, H, W = x.shape
        cq = C // 4
        assert cq == self.num_features
        gamma_q = self.gamma.reshape(cq)
        beta_c = self.beta.reshape(C)
        eps = jnp.float32(self.eps)

        if self.training:
            out, mean_c, quat_var = _qbn_forward_train_jit(x, gamma_q, beta_c, eps)
            # Running-buffer update (torch semantics, incl. n/(n-1) with
            # n = batch size).  Functional, outside the kernels.
            m = self.momentum
            mr, mi, mj, mk = jnp.split(mean_c, 4)
            self.running_mean_r = m * self.running_mean_r + (1.0 - m) * mr
            self.running_mean_i = m * self.running_mean_i + (1.0 - m) * mi
            self.running_mean_j = m * self.running_mean_j + (1.0 - m) * mj
            self.running_mean_k = m * self.running_mean_k + (1.0 - m) * mk
            self.running_variance = (
                m * self.running_variance
                + (1.0 - m) * (N * 1.0 / (N - 1) * quat_var)
            )
            return out
        else:
            mean_c = jnp.concatenate([self.running_mean_r, self.running_mean_i,
                                      self.running_mean_j, self.running_mean_k])
            return _qbn_forward_eval_jit(x, gamma_q, beta_c, mean_c,
                                         self.running_variance, eps)


# ----------------------------------------------------------------------------
# Plain-JAX references (mirror the PyTorch forward exactly) for self-test
# ----------------------------------------------------------------------------
def _reference_train(x, gamma, beta, eps):
    N, C, H, W = x.shape
    cq = C // 4
    r, i, j, k = jnp.split(x, 4, axis=1)
    mean_r = jnp.mean(r, axis=(0, 2, 3))
    mean_i = jnp.mean(i, axis=(0, 2, 3))
    mean_j = jnp.mean(j, axis=(0, 2, 3))
    mean_k = jnp.mean(k, axis=(0, 2, 3))
    dr = r - mean_r.reshape(1, cq, 1, 1)
    di = i - mean_i.reshape(1, cq, 1, 1)
    dj = j - mean_j.reshape(1, cq, 1, 1)
    dk = k - mean_k.reshape(1, cq, 1, 1)
    quat_var = jnp.mean(dr ** 2 + di ** 2 + dj ** 2 + dk ** 2, axis=(0, 2, 3))
    denom = jnp.sqrt(quat_var + eps).reshape(1, cq, 1, 1)
    g = gamma.reshape(1, cq, 1, 1)
    bparts = jnp.split(beta.reshape(1, C, 1, 1), 4, axis=1)
    new_r = g * (dr / denom) + bparts[0]
    new_i = g * (di / denom) + bparts[1]
    new_j = g * (dj / denom) + bparts[2]
    new_k = g * (dk / denom) + bparts[3]
    return jnp.concatenate([new_r, new_i, new_j, new_k], axis=1)


def _reference_eval(x, gamma, beta, mr, mi, mj, mk, run_var, eps):
    N, C, H, W = x.shape
    cq = C // 4
    r, i, j, k = jnp.split(x, 4, axis=1)
    denom = jnp.sqrt(run_var + eps).reshape(1, cq, 1, 1)
    g = gamma.reshape(1, cq, 1, 1)
    bparts = jnp.split(beta.reshape(1, C, 1, 1), 4, axis=1)
    outs = []
    for comp, mean, bp in zip((r, i, j, k), (mr, mi, mj, mk), bparts):
        outs.append(g * ((comp - mean.reshape(1, cq, 1, 1)) / denom) + bp)
    return jnp.concatenate(outs, axis=1)


# ----------------------------------------------------------------------------
# Self-test
# ----------------------------------------------------------------------------
if __name__ == "__main__":
    key = jax.random.PRNGKey(0)

    # --- shape 1: N=2, C=4 (one quaternion channel), 16x16 spatial ----------
    N, C, H, W = 2, 4, 16, 16
    x = jax.random.normal(key, (N, C, H, W), dtype=jnp.float32)

    mod = QuaternionBatchNorm2dPallas(num_features=C, training=True)
    out = mod(x)
    jax.block_until_ready(out)
    assert out.shape == (N, C, H, W)

    ref = _reference_train(x, mod.gamma.reshape(-1), mod.beta.reshape(-1), mod.eps)
    np.testing.assert_allclose(np.asarray(out), np.asarray(ref), rtol=1e-5, atol=1e-5)

    # eval path uses the running buffers that were just updated.
    mod.training = False
    out_eval = mod(x)
    jax.block_until_ready(out_eval)
    ref_eval = _reference_eval(
        x, mod.gamma.reshape(-1), mod.beta.reshape(-1),
        mod.running_mean_r, mod.running_mean_i,
        mod.running_mean_j, mod.running_mean_k,
        mod.running_variance, mod.eps)
    np.testing.assert_allclose(np.asarray(out_eval), np.asarray(ref_eval),
                               rtol=1e-5, atol=1e-5)

    # --- shape 2: C=16 (4 quaternion channels), non-128-multiple spatial,
    #              non-trivial gamma / beta, shifted mean (stability check) ---
    x2 = 3.0 + jax.random.normal(jax.random.PRNGKey(1), (4, 16, 8, 12),
                                 dtype=jnp.float32)
    mod2 = QuaternionBatchNorm2dPallas(num_features=16, gamma_init=0.7, training=True)
    mod2.beta = jnp.linspace(-1.0, 1.0, 16, dtype=jnp.float32).reshape(1, 16, 1, 1)
    out2 = mod2(x2)
    jax.block_until_ready(out2)
    ref2 = _reference_train(x2, mod2.gamma.reshape(-1), mod2.beta.reshape(-1), mod2.eps)
    np.testing.assert_allclose(np.asarray(out2), np.asarray(ref2), rtol=1e-5, atol=1e-5)

    print("KERNEL_OK")
</pallas_src>

<mosaic_0001>
module attributes {stable_mosaic.version = 11 : i64} {
  func.func @kernel(%arg0: i32, %arg1: i32, %arg2: memref<8x128xf32, #tpu.memory_space<vmem>>, %arg3: memref<1x1x8x1xf32, #tpu.memory_space<vmem>>, %arg4: memref<1x1x8x1xf32, #tpu.memory_space<vmem>>) attributes {dimension_semantics = [#tpu.dimension_semantics<parallel>, #tpu.dimension_semantics<parallel>], iteration_bounds = array<i64: 1, 2>, scalar_prefetch = 0 : i64, scratch_operands = 0 : i64, tpu.core_type = #tpu.core_type<tc>, window_params = [{transform_indices = @transform_0, window_bounds = array<i64: 8, 128>}, {transform_indices = @transform_1, window_bounds = array<i64: 1, 1, 8, 1>}, {transform_indices = @transform_2, window_bounds = array<i64: 1, 1, 8, 1>}]} {
    %c0 = arith.constant 0 : index
    %c0_0 = arith.constant 0 : index
    %0 = vector.load %arg2[%c0, %c0_0] : memref<8x128xf32, #tpu.memory_space<vmem>>, vector<8x128xf32>
    %cst = arith.constant dense<0.000000e+00> : vector<8xf32>
    %1 = vector.multi_reduction <add>, %0, %cst [1] : vector<8x128xf32> to vector<8xf32>
    %2 = vector.shape_cast %1 : vector<8xf32> to vector<8x1xf32>
    %cst_1 = arith.constant 7.812500e-03 : f32
    %3 = vector.broadcast %cst_1 : f32 to vector<8x1xf32>
    %4 = arith.mulf %2, %3 : vector<8x1xf32>
    %5 = vector.broadcast %4 : vector<8x1xf32> to vector<8x128xf32>
    %6 = arith.subf %0, %5 : vector<8x128xf32>
    %7 = arith.mulf %6, %6 : vector<8x128xf32>
    %cst_2 = arith.constant dense<0.000000e+00> : vector<8xf32>
    %8 = vector.multi_reduction <add>, %7, %cst_2 [1] : vector<8x128xf32> to vector<8xf32>
    %9 = vector.shape_cast %8 : vector<8xf32> to vector<8x1xf32>
    %10 = vector.shape_cast %2 : vector<8x1xf32> to vector<1x1x8x1xf32>
    %c0_3 = arith.constant 0 : index
    %c0_4 = arith.constant 0 : index
    %c0_5 = arith.constant 0 : index
    %c0_6 = arith.constant 0 : index
    %11 = vector.load %arg3[%c0_3, %c0_4, %c0_5, %c0_6] : memref<1x1x8x1xf32, #tpu.memory_space<vmem>>, vector<1x1x8x1xf32>
    tpu.vector_store %arg3[%c0_3, %c0_4, %c0_5, %c0_6], %10 {strides = array<i32>} : memref<1x1x8x1xf32, #tpu.memory_space<vmem>>, vector<1x1x8x1xf32>,
    %12 = vector.shape_cast %9 : vector<8x1xf32> to vector<1x1x8x1xf32>
    %c0_7 = arith.constant 0 : index
    %c0_8 = arith.constant 0 : index
    %c0_9 = arith.constant 0 : index
    %c0_10 = arith.constant 0 : index
    %13 = vector.load %arg4[%c0_7, %c0_8, %c0_9, %c0_10] : memref<1x1x8x1xf32, #tpu.memory_space<vmem>>, vector<1x1x8x1xf32>
    tpu.vector_store %arg4[%c0_7, %c0_8, %c0_9, %c0_10], %12 {strides = array<i32>} : memref<1x1x8x1xf32, #tpu.memory_space<vmem>>, vector<1x1x8x1xf32>,
    return
  }
  func.func @transform_0(%arg0: i32, %arg1: i32) -> (i32, i32) {
    %c0_i32 = arith.constant 0 : i32
    return %arg0, %arg1 : i32, i32
  }
  func.func @transform_1(%arg0: i32, %arg1: i32) -> (i32, i32, i32, i32) {
    %c0_i32 = arith.constant 0 : i32
    %c0_i32_0 = arith.constant 0 : i32
    %c0_i32_1 = arith.constant 0 : i32
    return %arg0, %arg1, %c0_i32, %c0_i32_0 : i32, i32, i32, i32
  }
  func.func @transform_2(%arg0: i32, %arg1: i32) -> (i32, i32, i32, i32) {
    %c0_i32 = arith.constant 0 : i32
    %c0_i32_0 = arith.constant 0 : i32
    %c0_i32_1 = arith.constant 0 : i32
    return %arg0, %arg1, %c0_i32, %c0_i32_0 : i32, i32, i32, i32
  }
}

module attributes {stable_mosaic.version = 11 : i64} {
  func.func @_affine_kernel(%arg0: i32, %arg1: i32, %arg2: memref<8x128xf32, #tpu.memory_space<vmem>>, %arg3: memref<8x1xf32, #tpu.memory_space<vmem>>, %arg4: memref<8x1xf32, #tpu.memory_space<vmem>>, %arg5: memref<8x128xf32, #tpu.memory_space<vmem>>) attributes {dimension_semantics = [#tpu.dimension_semantics<parallel>, #tpu.dimension_semantics<parallel>], iteration_bounds = array<i64: 1, 2>, scalar_prefetch = 0 : i64, scratch_operands = 0 : i64, tpu.core_type = #tpu.core_type<tc>, window_params = [{transform_indices = @transform_0, window_bounds = array<i64: 8, 128>}, {transform_indices = @transform_1, window_bounds = array<i64: 8, 1>}, {transform_indices = @transform_2, window_bounds = array<i64: 8, 1>}, {transform_indices = @transform_3, window_bounds = array<i64: 8, 128>}]} {
    %c0 = arith.constant 0 : index
    %c0_0 = arith.constant 0 : index
    %0 = vector.load %arg2[%c0, %c0_0] : memref<8x128xf32, #tpu.memory_space<vmem>>, vector<8x128xf32>
    %c0_1 = arith.constant 0 : index
    %c0_2 = arith.constant 0 : index
    %1 = vector.load %arg3[%c0_1, %c0_2] : memref<8x1xf32, #tpu.memory_space<vmem>>, vector<8x1xf32>
    %2 = vector.broadcast %1 : vector<8x1xf32> to vector<8x128xf32>
    %3 = arith.mulf %0, %2 : vector<8x128xf32>
    %c0_3 = arith.constant 0 : index
    %c0_4 = arith.constant 0 : index
    %4 = vector.load %arg4[%c0_3, %c0_4] : memref<8x1xf32, #tpu.memory_space<vmem>>, vector<8x1xf32>
    %5 = vector.broadcast %4 : vector<8x1xf32> to vector<8x128xf32>
    %6 = arith.addf %3, %5 : vector<8x128xf32>
    %c0_5 = arith.constant 0 : index
    %c0_6 = arith.constant 0 : index
    %7 = vector.load %arg5[%c0_5, %c0_6] : memref<8x128xf32, #tpu.memory_space<vmem>>, vector<8x128xf32>
    tpu.vector_store %arg5[%c0_5, %c0_6], %6 {strides = array<i32>} : memref<8x128xf32, #tpu.memory_space<vmem>>, vector<8x128xf32>,
    return
  }
  func.func @transform_0(%arg0: i32, %arg1: i32) -> (i32, i32) {
    %c0_i32 = arith.constant 0 : i32
    return %arg0, %arg1 : i32, i32
  }
  func.func @transform_1(%arg0: i32, %arg1: i32) -> (i32, i32) {
    %c0_i32 = arith.constant 0 : i32
    %c0_i32_0 = arith.constant 0 : i32
    return %arg0, %c0_i32 : i32, i32
  }
  func.func @transform_2(%arg0: i32, %arg1: i32) -> (i32, i32) {
    %c0_i32 = arith.constant 0 : i32
    %c0_i32_0 = arith.constant 0 : i32
    return %arg0, %c0_i32 : i32, i32
  }
  func.func @transform_3(%arg0: i32, %arg1: i32) -> (i32, i32) {
    %c0_i32 = arith.constant 0 : i32
    return %arg0, %arg1 : i32, i32
  }
}

</mosaic_0001>

<bundles_post_ra>
// kernel: _qbn_forward_train.2
= control target key start
LH: loop header
LB: loop body
LE: loop exit
PB: predicated region body
PF: predicated region fallthrough
CT: control target
= control target key end

     0   :  { %s410_s9 = smov 0   ;;  %s412_s10 = smov 0   ;;  %s439_s0 = inlined_call_operand.vmem [shape: f32[8,256], index: 0, kind: input, shape index: {}]   ;;  %s440_s1 = inlined_call_operand.vmem [shape: f32[1,2,8,1], index: 1, kind: output, shape index: {0}]   ;;  %s441_s2 = inlined_call_operand.vmem [shape: f32[1,2,8,1], index: 2, kind: output, shape index: {1}]  }
   0x1   :  { %s414_s11 = smov 0  }
   0x2 LB: > { %s22_s12 = sadd.s32 1, %s389_s10  ;;  %p341_p0 = scmp.ge.s32.totalorder %s393_s11, 1  ;;  %s393_s11 = sphi %s414_s11, %s13_s11   ;;  %s389_s10 = sphi %s412_s10, %s443_s10   ;;  %s385_s9 = sphi %s410_s9, %s442_s9  }
   0x3   : > { %p23_p1 = scmp.ge.s32.totalorder %s22_s12, 2  ;;  %p136_p2 = scmp.lt.s32.totalorder %s393_s11, 3 }
   0x5   : > { %s445_s12 = smov (%p23_p1, %s22_s12), 0  ;;  %p137_p3 = pnand %p341_p0, %p136_p2 }
   0x6   : > { %p174_p4 = scmp.lt.s32.totalorder (!%p137_p3), %s385_s9, 1  ;;  %vm204_vm0 = vcmask (!%p137_p3), 7168  }
   0x7   : > { %140 = sbr.rel (%p137_p3) target bundleno = 309 (0x135), region = 24 }
   0xe   : > { %s447_s9 = smov (!%p174_p4, %s385_s9), 1 }
   0xf   : > { %s342_s13 = sshll.u32 %s447_s9, 3 }
  0x10   : > { %s179_s16 = scalar_lea.vmem %s439_s0, %s342_s13  ;;  %s187_s19 = scalar_lea.vmem %s440_s1, %s342_s13 }
  0x11   : > { %v196_v0 = vld [vmem:[%s179_s16] sm:$0xff]  ;;  %s195_s22 = scalar_lea.vmem %s441_s2, %s342_s13 }
  0x12   : > { %197 = vadd.xlane.f32.xlu0 %v196_v0 }
  0x9f   : > { %v198_v1 = vpop.xlane.xlu0 %197 }
  0xa0   : > { %v199_v2 = vmul.f32 0.0078125, %v198_v1  ;;  %205 = vst.msk [vmem:[%s187_s19] sm:$0xff] %vm204_vm0, %v198_v1 }
  0xa2   : > { %v200_v3 = vsub.f32 %v196_v0, %v199_v2 }
  0xa4   : > { %v201_v4 = vmul.f32 %v200_v3, %v200_v3 }
  0xa6   : > { %202 = vadd.xlane.f32.xlu0 %v201_v4 }
 0x133   : > { %v203_v5 = vpop.xlane.xlu0 %202 }
 0x134   : > { %206 = vst.msk [vmem:[%s195_s22] sm:$0xff] %vm204_vm0, %v203_v5 }
 0x135 PF: > { %s13_s11 = sadd.s32 1, %s393_s11   ;;  %s442_s9 = smov %s389_s10 }
 0x136   : > { %p10_p5 = scmp.ge.s32.totalorder %s13_s11, 4   ;;  %s443_s10 = smov %s445_s12 }
 0x138   :  { %12 = sbr.rel (!%p10_p5) target bundleno = 2 (0x2), region = 66 }

// kernel: _qbn_forward_train.3
= control target key start
LH: loop header
LB: loop body
LE: loop exit
PB: predicated region body
PF: predicated region fallthrough
CT: control target
= control target key end

     0   :  { %s448_s12 = smov 0   ;;  %s450_s13 = smov 0   ;;  %s480_s0 = inlined_call_operand.vmem [shape: f32[8,256], index: 0, kind: input, shape index: {}]   ;;  %s481_s1 = inlined_call_operand.vmem [shape: f32[8,1], index: 1, kind: input, shape index: {}]   ;;  %s482_s2 = inlined_call_operand.vmem [shape: f32[8,1], index: 2, kind: input, shape index: {}]   ;;  %s483_s3 = inlined_call_operand.vmem [shape: f32[8,256], index: 3, kind: output, shape index: {}]  }
   0x1   :  { %s452_s14 = smov 0  }
   0x2 LB: > { %s22_s15 = sadd.s32 1, %s421_s13  ;;  %p372_p0 = scmp.ge.s32.totalorder %s425_s14, 1  ;;  %s425_s14 = sphi %s452_s14, %s13_s14   ;;  %s421_s13 = sphi %s450_s13, %s485_s13   ;;  %s417_s12 = sphi %s448_s12, %s484_s12  }
   0x3   : > { %p23_p1 = scmp.ge.s32.totalorder %s22_s15, 2  ;;  %p174_p2 = scmp.lt.s32.totalorder %s425_s14, 3 }
   0x5   : > { %s487_s15 = smov (%p23_p1, %s22_s15), 0  ;;  %p175_p3 = pnand %p372_p0, %p174_p2 }
   0x6   : > { %v237_v0 = vld [vmem:[%s481_s1] sm:$0xff] (!%p175_p3)  ;;  %v427_v1 = vmov (!%p175_p3), 0   ;;  %p214_p4 = scmp.lt.s32.totalorder (!%p175_p3), %s417_s12, 1 }
   0x7   : > { %178 = sbr.rel (%p175_p3) target bundleno = 143 (0x8f), region = 32  ;;  %402 = vset.pattern.permute.xlu0 (!%p175_p3), %v427_v1  ;;  %v244_v2 = vld [vmem:[%s482_s2] sm:$0xff] (!%p175_p3) }
   0x8   : > { %240 = vperm.xlu0 (!%p175_p3), %402, %v237_v0  }
   0xc   : > { %247 = vperm.xlu0 (!%p175_p3), %402, %v244_v2  }
   0xe   : > { %s489_s12 = smov (!%p214_p4, %s417_s12), 1 }
   0xf   : > { %s373_s20 = sshll.u32 %s489_s12, 3 }
  0x10   : > { %s219_s23 = scalar_lea.vmem %s480_s0, %s373_s20  ;;  %s235_s26 = scalar_lea.vmem %s483_s3, %s373_s20 }
  0x11   : > { %v236_v4 = vld [vmem:[%s219_s23] sm:$0xff] }
  0x87   : > { %v241_v3 = vpop.permute.xlu0 %240 }
  0x88   : > { %v243_v5 = vmul.f32 %v241_v3, %v236_v4 }
  0x8b   : > { %v248_v6 = vpop.permute.xlu0 %247 }
  0x8c   : > { %v250_v7 = vadd.f32 %v248_v6, %v243_v5 }
  0x8e   : > { %251 = vst [vmem:[%s235_s26] sm:$0xff] %v250_v7 }
  0x8f PF: > { %s13_s14 = sadd.s32 1, %s425_s14   ;;  %s484_s12 = smov %s421_s13 }
  0x90   : > { %p10_p5 = scmp.ge.s32.totalorder %s13_s14, 4   ;;  %s485_s13 = smov %s487_s15 }
  0x92   :  { %12 = sbr.rel (!%p10_p5) target bundleno = 2 (0x2), region = 68 }

</bundles_post_ra>
